<compile_context>
chip_gen: v7x
topology: tpu7x:2x2x1
jax: 0.10.0
libtpu: 0.0.40
codegen_flags: <defaults>
</compile_context>

<pallas_src>
import functools

import jax
import jax.numpy as jnp
from jax.experimental import pallas as pl
from jax.experimental.pallas import tpu as pltpu


def critic_kernel(x_ref, w1_ref, b1_ref, w2_ref, b2_ref, o_ref):
    # x:  [TB, D] bf16    w1: [D, H] bf16    b1: [1, H] f32
    # w2: [1, H]  f32     b2: [1, 1] f32 (SMEM)     o: [TB, 1] f32
    # Layer 1: MXU matmul with f32 accumulation + bias + ReLU (VPU).
    h = jnp.dot(x_ref[...], w1_ref[...], preferred_element_type=jnp.float32)
    h = jnp.maximum(h + b1_ref[...], 0.0)
    # Layer 2: 512 -> 1 as VPU multiply + lane reduction (XLU) instead of a
    # degenerate N=1 MXU matmul; bias added as an SMEM scalar.
    out = jnp.sum(h * w2_ref[...], axis=-1, keepdims=True) + b2_ref[0, 0]
    o_ref[...] = out.astype(o_ref.dtype)


@functools.partial(jax.jit, static_argnames=())
def cartpole_critic(x, w1, b1, w2_row, b2):
    """x: [B, D] -> [B, 1] float32.

    w1:     [D, H]   (fc1.weight transposed)
    b1:     [1, H]
    w2_row: [1, H]   (fc2.weight, PyTorch layout [out=1, in=H])
    b2:     [1, 1]
    """
    B, D = x.shape
    H = w1.shape[1]
    assert w1.shape == (D, H) and b1.shape == (1, H)
    assert w2_row.shape == (1, H) and b2.shape == (1, 1)

    # bf16 inputs for the MXU matmul; accumulation stays f32 in-kernel.
    x_bf = x.astype(jnp.bfloat16)
    w1_bf = w1.astype(jnp.bfloat16)
    b1_f = b1.astype(jnp.float32)
    w2_f = w2_row.astype(jnp.float32)
    b2_f = b2.astype(jnp.float32)

    # Batch tile: whole batch if small, otherwise 256-row tiles (multiple of
    # the 8-sublane / 128-row MXU granularity) with weights resident in VMEM.
    TB = B if B <= 256 else 256
    assert B % TB == 0, "batch must be a multiple of the 256-row tile"
    grid = (B // TB,)

    flops = 2 * B * D * H + 2 * B * H
    bytes_accessed = (
        x_bf.size * 2 + w1_bf.size * 2 + b1_f.size * 4
        + w2_f.size * 4 + b2_f.size * 4 + B * 1 * 4
    )

    return pl.pallas_call(
        critic_kernel,
        out_shape=jax.ShapeDtypeStruct((B, 1), jnp.float32),
        grid=grid,
        in_specs=[
            pl.BlockSpec((TB, D), lambda i: (i, 0)),   # x: tiled over batch
            pl.BlockSpec((D, H), lambda i: (0, 0)),    # w1: resident
            pl.BlockSpec((1, H), lambda i: (0, 0)),    # b1: resident
            pl.BlockSpec((1, H), lambda i: (0, 0)),    # w2 row: resident
            pl.BlockSpec(memory_space=pltpu.SMEM),     # b2: scalar in SMEM
        ],
        out_specs=pl.BlockSpec((TB, 1), lambda i: (i, 0)),
        compiler_params=pltpu.CompilerParams(
            dimension_semantics=("parallel",),         # 2x on v7x dual-TC
        ),
        cost_estimate=pl.CostEstimate(
            flops=flops, transcendentals=0, bytes_accessed=bytes_accessed
        ),
    )(x_bf, w1_bf, b1_f, w2_f, b2_f)


def init_params(key, input_shape, hidden=512):
    """Deterministic synthetic init (PyTorch-style uniform fan-in bounds)."""
    k1, k2, k3, k4 = jax.random.split(key, 4)
    bound1 = 1.0 / jnp.sqrt(input_shape)
    bound2 = 1.0 / jnp.sqrt(hidden)
    w1 = jax.random.uniform(k1, (input_shape, hidden), jnp.float32, -bound1, bound1)
    b1 = jax.random.uniform(k2, (1, hidden), jnp.float32, -bound1, bound1)
    w2_row = jax.random.uniform(k3, (1, hidden), jnp.float32, -bound2, bound2)
    b2 = jax.random.uniform(k4, (1, 1), jnp.float32, -bound2, bound2)
    return w1, b1, w2_row, b2


if __name__ == "__main__":
    key = jax.random.PRNGKey(0)
    kx, kp = jax.random.split(key)

    batch = 8
    input_shape = 4  # CartPole observation dim
    x = jax.random.normal(kx, (batch, input_shape), dtype=jnp.float32)
    w1, b1, w2_row, b2 = init_params(kp, input_shape)

    out = cartpole_critic(x, w1, b1, w2_row, b2)
    out = jax.block_until_ready(out)
    assert out.shape == (batch, 1)

    # Reference 1: exactly what the kernel computes (bf16-quantized x, w1;
    # f32 math) -> tight tolerance.
    xq = x.astype(jnp.bfloat16).astype(jnp.float32)
    w1q = w1.astype(jnp.bfloat16).astype(jnp.float32)
    ref_q = jnp.maximum(xq @ w1q + b1, 0.0) @ w2_row.T + b2
    assert jnp.allclose(out, ref_q, atol=1e-3, rtol=1e-3)

    # Reference 2: full-f32 PyTorch-equivalent forward -> loose tolerance
    # (inputs are bf16-quantized in the kernel, accumulation is f32).
    ref_f32 = jnp.maximum(x @ w1 + b1, 0.0) @ w2_row.T + b2
    assert jnp.allclose(out, ref_f32, atol=2e-2, rtol=2e-2)

    print("KERNEL_OK")
</pallas_src>

<mosaic_0001>
module attributes {stable_mosaic.version = 11 : i64} {
  func.func @critic_kernel(%arg0: i32, %arg1: memref<8x4xbf16, #tpu.memory_space<vmem>>, %arg2: memref<4x512xbf16, #tpu.memory_space<vmem>>, %arg3: memref<1x512xf32, #tpu.memory_space<vmem>>, %arg4: memref<1x512xf32, #tpu.memory_space<vmem>>, %arg5: memref<1x1xf32, #tpu.memory_space<smem>>, %arg6: memref<8x1xf32, #tpu.memory_space<vmem>>) attributes {dimension_semantics = [#tpu.dimension_semantics<parallel>], iteration_bounds = array<i64: 1>, scalar_prefetch = 0 : i64, scratch_operands = 0 : i64, tpu.core_type = #tpu.core_type<tc>, window_params = [{transform_indices = @transform_0, window_bounds = array<i64: 8, 4>}, {pipeline_mode = #tpu.pipeline_mode<synchronous>, transform_indices = @transform_1, window_bounds = array<i64: 4, 512>}, {pipeline_mode = #tpu.pipeline_mode<synchronous>, transform_indices = @transform_2, window_bounds = array<i64: 1, 512>}, {pipeline_mode = #tpu.pipeline_mode<synchronous>, transform_indices = @transform_3, window_bounds = array<i64: 1, 512>}, {transform_indices = @transform_4, window_bounds = array<i64: 1, 1>}, {transform_indices = @transform_5, window_bounds = array<i64: 8, 1>}]} {
    %c0 = arith.constant 0 : index
    %c0_0 = arith.constant 0 : index
    %0 = vector.load %arg1[%c0, %c0_0] : memref<8x4xbf16, #tpu.memory_space<vmem>>, vector<8x4xbf16>
    %c0_1 = arith.constant 0 : index
    %c0_2 = arith.constant 0 : index
    %1 = vector.load %arg2[%c0_1, %c0_2] : memref<4x512xbf16, #tpu.memory_space<vmem>>, vector<4x512xbf16>
    %cst = arith.constant dense<0.000000e+00> : vector<8x512xf32>
    %2 = tpu.matmul %0, %1, %cst {dimension_numbers = #tpu.dot_dimension_numbers<[1], [0], [0], [1], [0, 0, 1, 1], [], []>} : vector<8x4xbf16>, vector<4x512xbf16>, vector<8x512xf32> -> vector<8x512xf32>
    %c0_3 = arith.constant 0 : index
    %c0_4 = arith.constant 0 : index
    %3 = vector.load %arg3[%c0_3, %c0_4] : memref<1x512xf32, #tpu.memory_space<vmem>>, vector<1x512xf32>
    %4 = vector.broadcast %3 : vector<1x512xf32> to vector<8x512xf32>
    %5 = arith.addf %2, %4 : vector<8x512xf32>
    %cst_5 = arith.constant 0.000000e+00 : f32
    %6 = vector.broadcast %cst_5 : f32 to vector<8x512xf32>
    %7 = arith.maximumf %5, %6 : vector<8x512xf32>
    %c0_6 = arith.constant 0 : index
    %c0_7 = arith.constant 0 : index
    %8 = vector.load %arg4[%c0_6, %c0_7] : memref<1x512xf32, #tpu.memory_space<vmem>>, vector<1x512xf32>
    %9 = vector.broadcast %8 : vector<1x512xf32> to vector<8x512xf32>
    %10 = arith.mulf %7, %9 : vector<8x512xf32>
    %cst_8 = arith.constant dense<0.000000e+00> : vector<8xf32>
    %11 = vector.multi_reduction <add>, %10, %cst_8 [1] : vector<8x512xf32> to vector<8xf32>
    %12 = vector.shape_cast %11 : vector<8xf32> to vector<8x1xf32>
    %c0_9 = arith.constant 0 : index
    %c0_10 = arith.constant 0 : index
    %13 = memref.load %arg5[%c0_9, %c0_10] : memref<1x1xf32, #tpu.memory_space<smem>>
    %14 = vector.broadcast %13 : f32 to vector<8x1xf32>
    %15 = arith.addf %12, %14 : vector<8x1xf32>
    %c0_11 = arith.constant 0 : index
    %c0_12 = arith.constant 0 : index
    %16 = vector.load %arg6[%c0_11, %c0_12] : memref<8x1xf32, #tpu.memory_space<vmem>>, vector<8x1xf32>
    tpu.vector_store %arg6[%c0_11, %c0_12], %15 {strides = array<i32>} : memref<8x1xf32, #tpu.memory_space<vmem>>, vector<8x1xf32>,
    return
  }
  func.func @transform_0(%arg0: i32) -> (i32, i32) {
    %c0_i32 = arith.constant 0 : i32
    %c0_i32_0 = arith.constant 0 : i32
    return %arg0, %c0_i32 : i32, i32
  }
  func.func @transform_1(%arg0: i32) -> (i32, i32) {
    %c0_i32 = arith.constant 0 : i32
    %c0_i32_0 = arith.constant 0 : i32
    %c0_i32_1 = arith.constant 0 : i32
    return %c0_i32, %c0_i32_0 : i32, i32
  }
  func.func @transform_2(%arg0: i32) -> (i32, i32) {
    %c0_i32 = arith.constant 0 : i32
    %c0_i32_0 = arith.constant 0 : i32
    %c0_i32_1 = arith.constant 0 : i32
    return %c0_i32, %c0_i32_0 : i32, i32
  }
  func.func @transform_3(%arg0: i32) -> (i32, i32) {
    %c0_i32 = arith.constant 0 : i32
    %c0_i32_0 = arith.constant 0 : i32
    %c0_i32_1 = arith.constant 0 : i32
    return %c0_i32, %c0_i32_0 : i32, i32
  }
  func.func @transform_4(%arg0: i32) -> (i32, i32) {
    %c0_i32 = arith.constant 0 : i32
    %c0_i32_0 = arith.constant 0 : i32
    %c0_i32_1 = arith.constant 0 : i32
    return %c0_i32, %c0_i32_0 : i32, i32
  }
  func.func @transform_5(%arg0: i32) -> (i32, i32) {
    %c0_i32 = arith.constant 0 : i32
    %c0_i32_0 = arith.constant 0 : i32
    return %arg0, %c0_i32 : i32, i32
  }
}

</mosaic_0001>

<bundles_post_ra>
// kernel: cartpole_critic.1
= control target key start
LH: loop header
LB: loop body
LE: loop exit
PB: predicated region body
PF: predicated region fallthrough
CT: control target
= control target key end

     0   :  { %v26_v0 = vlaneseq  ;;  %v214_v2 = vmov 1983009808   ;;  %v215_v4 = vmov 0   ;;  %vm68_vm0 = vcmask 1041408   ;;  %s264_s1 = inlined_call_operand.vmem [shape: bf16[4,512], index: 1, kind: input, shape index: {}]   ;;  %s265_s0 = inlined_call_operand.vmem [shape: bf16[8,4], index: 0, kind: input, shape index: {}]   ;;  %s266_s2 = inlined_call_operand.vmem [shape: f32[1,512], index: 2, kind: input, shape index: {}]   ;;  %s267_s3 = inlined_call_operand.vmem [shape: f32[1,512], index: 3, kind: input, shape index: {}]   ;;  %s268_s4 = inlined_call_operand.<no memory space> [shape: f32[1,1], index: 4, kind: input, shape index: {}]   ;;  %s269_s5 = inlined_call_operand.vmem [shape: f32[8,1], index: 5, kind: output, shape index: {}]  }
   0x1   :  { %v23_v1 = vld [vmem:[%s264_s1] sm:$0xff]  ;;  %v49_v3 = vunpack.c.l.s4 %v214_v2  ;;  %113 = vmatprep.mubr.bf16.mxu0 %v215_v4  ;;  %154 = vmatprep.mubr.bf16.mxu1 %v215_v4  ;;  %vm64_vm1 = vcmask 31744   ;;  %v199_v53 = vstv %s268_s4  ;;  %vm201_vm2 = vcmask 7168  }
   0x2   :  { %v27_v5 = vshrl.u32 %v26_v0, 7  ;;  %v47_v7 = vcombine.high %v23_v1, %v23_v1  ;;  %v22_v15 = vld [vmem:[%s265_s0] sm:$0xf] }
   0x3   :  { %v50_v6 = vunpack.c.0.s8 %v49_v3  ;;  %v24_v18 = vld [vmem:[%s266_s2] sm:$0xf] }
   0x4   :  { %v28_v16 = vsub.s32 0, %v27_v5  ;;  %v36_v17 = vsub.s32 2, %v27_v5  ;;  %v32_v19 = vsub.s32 1, %v27_v5  ;;  %v40_v20 = vsub.s32 3, %v27_v5  ;;  %v167_v23 = vld [vmem:[%s267_s3] sm:$0xf] }
   0x5   :  { %v53_v8 = vsub.s32 %v50_v6, %v27_v5 }
   0x6   :  { %v29_v21 = vrot.slane %v24_v18, %v28_v16  ;;  %v37_v22 = vrot.slane %v24_v18, %v36_v17  ;;  %v33_v24 = vrot.slane %v24_v18, %v32_v19  ;;  %v41_v25 = vrot.slane %v24_v18, %v40_v20 }
   0x7   :  { %v54_v9 = vrot.slane %v23_v1, %v53_v8  ;;  %v61_v10 = vrot.slane %v47_v7, %v53_v8  ;;  %v172_v29 = vrot.slane %v167_v23, %v28_v16  ;;  %v180_v33 = vrot.slane %v167_v23, %v36_v17 }
   0x8   :  { %v176_v35 = vrot.slane %v167_v23, %v32_v19  ;;  %v184_v48 = vrot.slane %v167_v23, %v40_v20 }
   0x9   :  { %v62_v11 = vcombine.high %v54_v9, %v54_v9  ;;  %v63_v12 = vcombine.high %v61_v10, %v61_v10  ;;  %v70_v13 = vsel %vm68_vm0, %v54_v9, 0  ;;  %v76_v14 = vsel %vm68_vm0, %v61_v10, 0 }
   0xb   :  { %207 = vmatprep.subr.msk.bf16.mxu0 %vm68_vm0, %v62_v11  ;;  %209 = vmatprep.subr.msk.bf16.mxu1 %vm68_vm0, %v63_v12 }
   0xc   :  { %82 = vmatpush1.bf16.msra.mxu0 %v70_v13  ;;  %123 = vmatpush1.bf16.msra.mxu1 %v76_v14 }
   0xf   :  { %208 = vmatmul.mubr.msk.bf16.vlgmr.msra.gmra.mrb[0].mxu0 %vm64_vm1, %v22_v15  ;;  %210 = vmatmul.mubr.msk.bf16.vlgmr.msra.gmra.mrb[0].mxu1 %vm64_vm1, %v22_v15 }
  0xe2   :  { %v115_v26 = vpop.f32.mrb[0].mxu0  ;;  %v156_v27 = vpop.f32.mrb[0].mxu1 }
  0xe3   :  { %v116_v28 = vadd.f32 %v115_v26, %v29_v21  ;;  %v157_v30 = vadd.f32 %v156_v27, %v37_v22  ;;  %v117_v31 = vpop.f32.mrb[1].mxu0  ;;  %v158_v32 = vpop.f32.mrb[1].mxu1 }
  0xe4   :  { %v118_v34 = vadd.f32 %v117_v31, %v33_v24  ;;  %v159_v36 = vadd.f32 %v158_v32, %v41_v25  ;;  %v119_v37 = vpop.f32.mrb[2].mxu0  ;;  %v160_v38 = vpop.f32.mrb[2].mxu1 }
  0xe5   :  { %v163_v39 = vmax.f32 %v116_v28, 0.0  ;;  %v165_v40 = vmax.f32 %v157_v30, 0.0  ;;  %v120_v41 = vpop.f32.mrb[3].mxu0  ;;  %v161_v42 = vpop.f32.mrb[3].mxu1 }
  0xe6   :  { %v164_v43 = vmax.f32 %v118_v34, 0.0  ;;  %v166_v47 = vmax.f32 %v159_v36, 0.0 }
  0xe7   :  { %v189_v44 = vmul.f32 %v172_v29, %v163_v39  ;;  %v191_v45 = vmul.f32 %v180_v33, %v165_v40 }
  0xe8   :  { %v190_v46 = vmul.f32 %v176_v35, %v164_v43  ;;  %v192_v50 = vmul.f32 %v184_v48, %v166_v47 }
  0xea   :  { %v193_v49 = vadd.f32 %v190_v46, %v189_v44 }
  0xec   :  { %v194_v51 = vadd.f32 %v193_v49, %v191_v45 }
  0xee   :  { %v195_v52 = vadd.f32 %v194_v51, %v192_v50 }
  0xf0   :  { %196 = vadd.xlane.f32.xlu0 %v195_v52 }
 0x17d   :  { %v197_v54 = vpop.xlane.xlu0 %196 }
 0x17e   :  { %v200_v55 = vadd.f32 %v199_v53, %v197_v54 }
 0x180   :  { %202 = vst.msk [vmem:[%s269_s5] sm:$0xff] %vm201_vm2, %v200_v55 }

</bundles_post_ra>
